<compile_context>
chip_gen: v5e
topology: v5e:2x2
jax: 0.10.0
libtpu: 0.0.40
codegen_flags: <defaults>
</compile_context>

<pallas_src>
import functools

import jax
import jax.numpy as jnp
from jax import lax
from jax.experimental import pallas as pl
from jax.experimental.pallas import tpu as pltpu

LANE = 128      # TPU lane width: fused output slab padded to this
SUBLANE = 8     # f32 sublane granularity: batch padded to a multiple of this


def _rnn_seq_kernel(h0_ref, x_ref, w_ref, b_ref, negmask_ref, sel_ref,
                    out_ref, h_scratch, *, chunk):
    """One grid step = `chunk` RNN timesteps (unrolled inner loop).

    Lane layout of the 128-wide slab:
      [0, H)            hidden state / new hidden
      [H, H+O)          logits -> log-softmax output
      [H+O, H+O+I)      x_t (input lanes of the fused MXU operand; zero in z)
      [H+O+I, LANE)     zero padding
    The hidden state stays in the VMEM scratch across grid steps; the fused
    weight has zero rows for the logit/pad lanes so stale values are inert.
    """
    @pl.when(pl.program_id(1) == 0)
    def _():
        h_scratch[...] = h0_ref[...]

    # Loop-invariant operands, loaded once per chunk.
    w = w_ref[...]                   # [LANE, LANE] fused (W_h rows + W_x rows)
    bias = b_ref[...]                # [1, LANE]
    negmask = negmask_ref[...]       # 0 on logit lanes, -1e30 elsewhere
    sel = sel_ref[...]               # 1.0 on logit lanes, 0.0 elsewhere

    def step(i, carry):
        # Fused MXU operand: state slab + x packed into its own (zero) lanes.
        s = h_scratch[...] + x_ref[i]                       # [Bt, LANE]
        z = jnp.dot(s, w, preferred_element_type=jnp.float32) + bias
        # log-softmax restricted to the logit lanes (mask BEFORE exp).
        zm = z + negmask
        m = jnp.max(zm, axis=1, keepdims=True)
        lse = jnp.log(jnp.sum(jnp.exp(zm - m), axis=1, keepdims=True))
        h_scratch[...] = z                                  # recurrence stays in VMEM
        out_ref[i] = z - (m + lse) * sel                    # hidden lanes: z, logit lanes: log-probs
        return carry

    lax.fori_loop(0, chunk, step, 0, unroll=True)


def rnn_forward_seq(x_seq, h0, w_i2h, b_i2h, w_i2o, b_i2o, *, time_chunk=None):
    """Run the RNN cell over a whole sequence inside a single pallas_call.

    x_seq: [T, B, I], h0: [B, H].
    Returns (outputs [T, B, O], hiddens [T, B, H]) matching the PyTorch module's
    forward applied iteratively (hiddens[-1] is the final state).
    """
    T, B, I = x_seq.shape
    H = w_i2h.shape[1]
    O = w_i2o.shape[1]
    assert w_i2h.shape[0] == I + H and w_i2o.shape[0] == I + H
    assert H + O + I <= LANE, "fused lane layout requires H + O + I <= 128"

    X_OFF = H + O                     # lane offset where x_t lives in the slab

    # ---- one-time parameter prep (outside the time loop) ----
    w_fused = jnp.concatenate([w_i2h, w_i2o], axis=1).astype(jnp.float32)  # [I+H, H+O]
    b_fused = jnp.concatenate([b_i2h, b_i2o], axis=1).astype(jnp.float32)  # [1, H+O]

    W = jnp.zeros((LANE, LANE), jnp.float32)
    W = W.at[:H, :H + O].set(w_fused[I:])                # hidden-state rows
    W = W.at[X_OFF:X_OFF + I, :H + O].set(w_fused[:I])   # input rows (x packed here)
    bias = jnp.pad(b_fused, ((0, 0), (0, LANE - (H + O))))           # [1, LANE]

    lanes = jnp.arange(LANE)
    is_logit = (lanes >= H) & (lanes < H + O)
    negmask = jnp.where(is_logit, 0.0, -1e30).astype(jnp.float32)[None, :]
    sel = is_logit.astype(jnp.float32)[None, :]

    # ---- pad batch (sublane / batch-tile) and time (chunk) ----
    if B <= 128:
        Bt = max(SUBLANE, ((B + SUBLANE - 1) // SUBLANE) * SUBLANE)
        Bp = Bt
    else:
        Bt = 128                                          # one MXU-row-filling tile
        Bp = ((B + Bt - 1) // Bt) * Bt
    TT = time_chunk if time_chunk is not None else min(T, 16)
    Tp = ((T + TT - 1) // TT) * TT

    # x packed into its lane slot -> every DMA is lane-dense / unmasked.
    x_slab = jnp.pad(x_seq.astype(jnp.float32),
                     ((0, Tp - T), (0, Bp - B), (X_OFF, LANE - X_OFF - I)))
    h0_p = jnp.pad(h0.astype(jnp.float32), ((0, Bp - B), (0, LANE - H)))

    kernel = functools.partial(_rnn_seq_kernel, chunk=TT)
    grid = (Bp // Bt, Tp // TT)

    out_all = pl.pallas_call(
        kernel,
        out_shape=jax.ShapeDtypeStruct((Tp, Bp, LANE), jnp.float32),
        grid_spec=pltpu.PrefetchScalarGridSpec(
            num_scalar_prefetch=0,
            grid=grid,
            in_specs=[
                pl.BlockSpec((Bt, LANE), lambda b, t: (b, 0)),         # h0   (per-batch-tile resident)
                pl.BlockSpec((TT, Bt, LANE), lambda b, t: (t, b, 0)),  # x chunk (pipelined)
                pl.BlockSpec((LANE, LANE), lambda b, t: (0, 0)),       # fused W (resident)
                pl.BlockSpec((1, LANE), lambda b, t: (0, 0)),          # bias (resident)
                pl.BlockSpec((1, LANE), lambda b, t: (0, 0)),          # additive softmax mask
                pl.BlockSpec((1, LANE), lambda b, t: (0, 0)),          # logit selector
            ],
            out_specs=pl.BlockSpec((TT, Bt, LANE), lambda b, t: (t, b, 0)),
            scratch_shapes=[pltpu.VMEM((Bt, LANE), jnp.float32)],
        ),
        compiler_params=pltpu.CompilerParams(
            # Batch tiles are independent (megacore-parallel on v7x);
            # the time axis is a recurrence -> "arbitrary".
            dimension_semantics=("parallel", "arbitrary"),
        ),
    )(h0_p, x_slab, W, bias, negmask, sel)

    hiddens = out_all[:T, :B, :H]
    outputs = out_all[:T, :B, H:H + O]
    return outputs, hiddens


def rnn_forward(inp, hidden, w_i2h, b_i2h, w_i2o, b_i2o):
    """Exact single-step equivalent of RNN.forward(input, hidden) -> (output, hidden)."""
    outputs, hiddens = rnn_forward_seq(inp[None], hidden,
                                       w_i2h, b_i2h, w_i2o, b_i2o)
    return outputs[0], hiddens[0]


def reference_step(inp, hidden, w_i2h, b_i2h, w_i2o, b_i2o):
    combined = jnp.concatenate([inp, hidden], axis=1)
    new_hidden = combined @ w_i2h + b_i2h
    logits = combined @ w_i2o + b_i2o
    return jax.nn.log_softmax(logits, axis=1), new_hidden


if __name__ == "__main__":
    B, INPUT_SIZE, HIDDEN_SIZE, OUTPUT_SIZE, T = 2, 16, 32, 8, 8
    C = INPUT_SIZE + HIDDEN_SIZE

    key = jax.random.PRNGKey(0)
    k_x, k_wih, k_bih, k_wio, k_bio = jax.random.split(key, 5)

    x_seq = jax.random.normal(k_x, (T, B, INPUT_SIZE), dtype=jnp.float32)
    h0 = jnp.zeros((B, HIDDEN_SIZE), dtype=jnp.float32)   # initHidden (batched)

    scale = 1.0 / jnp.sqrt(jnp.float32(C))
    w_i2h = jax.random.uniform(k_wih, (C, HIDDEN_SIZE), jnp.float32, -scale, scale)
    b_i2h = jax.random.uniform(k_bih, (1, HIDDEN_SIZE), jnp.float32, -scale, scale)
    w_i2o = jax.random.uniform(k_wio, (C, OUTPUT_SIZE), jnp.float32, -scale, scale)
    b_i2o = jax.random.uniform(k_bio, (1, OUTPUT_SIZE), jnp.float32, -scale, scale)

    # Sequence kernel: whole recurrence in one pallas_call (single time chunk here).
    outs, hids = jax.block_until_ready(
        jax.jit(rnn_forward_seq)(x_seq, h0, w_i2h, b_i2h, w_i2o, b_i2o))
    assert outs.shape == (T, B, OUTPUT_SIZE) and hids.shape == (T, B, HIDDEN_SIZE)

    # Reference: apply the module's forward step by step.
    h = h0
    for t in range(T):
        ref_out, h = reference_step(x_seq[t], h, w_i2h, b_i2h, w_i2o, b_i2o)
        assert jnp.allclose(outs[t], ref_out, atol=1e-5), f"output mismatch at step {t}"
        assert jnp.allclose(hids[t], h, atol=1e-5), f"hidden mismatch at step {t}"

    # Single-step wrapper (module-exact signature/semantics).
    out1, h1 = jax.block_until_ready(
        jax.jit(rnn_forward)(x_seq[0], h0, w_i2h, b_i2h, w_i2o, b_i2o))
    ref_out1, ref_h1 = reference_step(x_seq[0], h0, w_i2h, b_i2h, w_i2o, b_i2o)
    assert jnp.allclose(out1, ref_out1, atol=1e-5)
    assert jnp.allclose(h1, ref_h1, atol=1e-5)

    print("KERNEL_OK")
</pallas_src>

<mosaic_0001>
module attributes {stable_mosaic.version = 11 : i64} {
  func.func @_rnn_seq_kernel(%arg0: i32, %arg1: i32, %arg2: memref<8x128xf32, #tpu.memory_space<vmem>>, %arg3: memref<8x8x128xf32, #tpu.memory_space<vmem>>, %arg4: memref<128x128xf32, #tpu.memory_space<vmem>>, %arg5: memref<1x128xf32, #tpu.memory_space<vmem>>, %arg6: memref<1x128xf32, #tpu.memory_space<vmem>>, %arg7: memref<1x128xf32, #tpu.memory_space<vmem>>, %arg8: memref<8x8x128xf32, #tpu.memory_space<vmem>>, %arg9: memref<8x128xf32, #tpu.memory_space<vmem>>) attributes {dimension_semantics = [#tpu.dimension_semantics<parallel>, #tpu.dimension_semantics<arbitrary>], iteration_bounds = array<i64: 1, 1>, scalar_prefetch = 0 : i64, scratch_operands = 1 : i64, tpu.core_type = #tpu.core_type<tc>, window_params = [{transform_indices = @transform_0, window_bounds = array<i64: 8, 128>}, {transform_indices = @transform_1, window_bounds = array<i64: 8, 8, 128>}, {pipeline_mode = #tpu.pipeline_mode<synchronous>, transform_indices = @transform_2, window_bounds = array<i64: 128, 128>}, {pipeline_mode = #tpu.pipeline_mode<synchronous>, transform_indices = @transform_3, window_bounds = array<i64: 1, 128>}, {pipeline_mode = #tpu.pipeline_mode<synchronous>, transform_indices = @transform_4, window_bounds = array<i64: 1, 128>}, {pipeline_mode = #tpu.pipeline_mode<synchronous>, transform_indices = @transform_5, window_bounds = array<i64: 1, 128>}, {transform_indices = @transform_6, window_bounds = array<i64: 8, 8, 128>}]} {
    %c0_i32 = arith.constant 0 : i32
    %0 = arith.cmpi eq, %arg1, %c0_i32 : i32
    %1 = arith.extui %0 : i1 to i32
    %c0_i32_0 = arith.constant 0 : i32
    %2 = arith.cmpi ne, %1, %c0_i32_0 : i32
    scf.if %2 {
      %c0_96 = arith.constant 0 : index
      %c0_97 = arith.constant 0 : index
      %231 = vector.load %arg2[%c0_96, %c0_97] : memref<8x128xf32, #tpu.memory_space<vmem>>, vector<8x128xf32>
      %c0_98 = arith.constant 0 : index
      %c0_99 = arith.constant 0 : index
      %232 = vector.load %arg9[%c0_98, %c0_99] : memref<8x128xf32, #tpu.memory_space<vmem>>, vector<8x128xf32>
      tpu.vector_store %arg9[%c0_98, %c0_99], %231 {strides = array<i32>} : memref<8x128xf32, #tpu.memory_space<vmem>>, vector<8x128xf32>,
    } else {
    }
    %c0 = arith.constant 0 : index
    %c0_1 = arith.constant 0 : index
    %3 = vector.load %arg4[%c0, %c0_1] : memref<128x128xf32, #tpu.memory_space<vmem>>, vector<128x128xf32>
    %c0_2 = arith.constant 0 : index
    %c0_3 = arith.constant 0 : index
    %4 = vector.load %arg5[%c0_2, %c0_3] : memref<1x128xf32, #tpu.memory_space<vmem>>, vector<1x128xf32>
    %c0_4 = arith.constant 0 : index
    %c0_5 = arith.constant 0 : index
    %5 = vector.load %arg6[%c0_4, %c0_5] : memref<1x128xf32, #tpu.memory_space<vmem>>, vector<1x128xf32>
    %c0_6 = arith.constant 0 : index
    %c0_7 = arith.constant 0 : index
    %6 = vector.load %arg7[%c0_6, %c0_7] : memref<1x128xf32, #tpu.memory_space<vmem>>, vector<1x128xf32>
    %c0_i32_8 = arith.constant 0 : i32
    %c0_9 = arith.constant 0 : index
    %c0_10 = arith.constant 0 : index
    %7 = vector.load %arg9[%c0_9, %c0_10] : memref<8x128xf32, #tpu.memory_space<vmem>>, vector<8x128xf32>
    %8 = arith.index_cast %c0_i32_8 : i32 to index
    %c0_11 = arith.constant 0 : index
    %c0_12 = arith.constant 0 : index
    %9 = vector.load %arg3[%8, %c0_11, %c0_12] : memref<8x8x128xf32, #tpu.memory_space<vmem>>, vector<1x8x128xf32>
    %10 = vector.shape_cast %9 : vector<1x8x128xf32> to vector<8x128xf32>
    %11 = arith.addf %7, %10 : vector<8x128xf32>
    %cst = arith.constant dense<0.000000e+00> : vector<8x128xf32>
    %12 = tpu.matmul %11, %3, %cst {dimension_numbers = #tpu.dot_dimension_numbers<[1], [0], [0], [1], [0, 0, 1, 1], [], []>} : vector<8x128xf32>, vector<128x128xf32>, vector<8x128xf32> -> vector<8x128xf32>
    %13 = vector.broadcast %4 : vector<1x128xf32> to vector<8x128xf32>
    %14 = arith.addf %12, %13 : vector<8x128xf32>
    %15 = vector.broadcast %5 : vector<1x128xf32> to vector<8x128xf32>
    %16 = arith.addf %14, %15 : vector<8x128xf32>
    %cst_13 = arith.constant dense<0xFF800000> : vector<8xf32>
    %17 = vector.multi_reduction <maximumf>, %16, %cst_13 [1] : vector<8x128xf32> to vector<8xf32>
    %18 = vector.shape_cast %17 : vector<8xf32> to vector<8x1xf32>
    %19 = vector.broadcast %18 : vector<8x1xf32> to vector<8x128xf32>
    %20 = arith.subf %16, %19 : vector<8x128xf32>
    %21 = math.exp %20 : vector<8x128xf32>
    %cst_14 = arith.constant dense<0.000000e+00> : vector<8xf32>
    %22 = vector.multi_reduction <add>, %21, %cst_14 [1] : vector<8x128xf32> to vector<8xf32>
    %23 = vector.shape_cast %22 : vector<8xf32> to vector<8x1xf32>
    %24 = math.log %23 : vector<8x1xf32>
    %c0_15 = arith.constant 0 : index
    %c0_16 = arith.constant 0 : index
    %25 = vector.load %arg9[%c0_15, %c0_16] : memref<8x128xf32, #tpu.memory_space<vmem>>, vector<8x128xf32>
    tpu.vector_store %arg9[%c0_15, %c0_16], %14 {strides = array<i32>} : memref<8x128xf32, #tpu.memory_space<vmem>>, vector<8x128xf32>,
    %26 = arith.addf %18, %24 : vector<8x1xf32>
    %27 = vector.broadcast %26 : vector<8x1xf32> to vector<8x128xf32>
    %28 = vector.broadcast %6 : vector<1x128xf32> to vector<8x128xf32>
    %29 = arith.mulf %27, %28 : vector<8x128xf32>
    %30 = arith.subf %14, %29 : vector<8x128xf32>
    %31 = arith.index_cast %c0_i32_8 : i32 to index
    %c0_17 = arith.constant 0 : index
    %c0_18 = arith.constant 0 : index
    %32 = vector.load %arg8[%31, %c0_17, %c0_18] : memref<8x8x128xf32, #tpu.memory_space<vmem>>, vector<1x8x128xf32>
    %33 = vector.shape_cast %32 : vector<1x8x128xf32> to vector<8x128xf32>
    %34 = vector.shape_cast %30 : vector<8x128xf32> to vector<1x8x128xf32>
    tpu.vector_store %arg8[%31, %c0_17, %c0_18], %34 {strides = array<i32>} : memref<8x8x128xf32, #tpu.memory_space<vmem>>, vector<1x8x128xf32>,
    %c1_i32 = arith.constant 1 : i32
    %c0_19 = arith.constant 0 : index
    %c0_20 = arith.constant 0 : index
    %35 = vector.load %arg9[%c0_19, %c0_20] : memref<8x128xf32, #tpu.memory_space<vmem>>, vector<8x128xf32>
    %36 = arith.index_cast %c1_i32 : i32 to index
    %c0_21 = arith.constant 0 : index
    %c0_22 = arith.constant 0 : index
    %37 = vector.load %arg3[%36, %c0_21, %c0_22] : memref<8x8x128xf32, #tpu.memory_space<vmem>>, vector<1x8x128xf32>
    %38 = vector.shape_cast %37 : vector<1x8x128xf32> to vector<8x128xf32>
    %39 = arith.addf %35, %38 : vector<8x128xf32>
    %cst_23 = arith.constant dense<0.000000e+00> : vector<8x128xf32>
    %40 = tpu.matmul %39, %3, %cst_23 {dimension_numbers = #tpu.dot_dimension_numbers<[1], [0], [0], [1], [0, 0, 1, 1], [], []>} : vector<8x128xf32>, vector<128x128xf32>, vector<8x128xf32> -> vector<8x128xf32>
    %41 = vector.broadcast %4 : vector<1x128xf32> to vector<8x128xf32>
    %42 = arith.addf %40, %41 : vector<8x128xf32>
    %43 = vector.broadcast %5 : vector<1x128xf32> to vector<8x128xf32>
    %44 = arith.addf %42, %43 : vector<8x128xf32>
    %cst_24 = arith.constant dense<0xFF800000> : vector<8xf32>
    %45 = vector.multi_reduction <maximumf>, %44, %cst_24 [1] : vector<8x128xf32> to vector<8xf32>
    %46 = vector.shape_cast %45 : vector<8xf32> to vector<8x1xf32>
    %47 = vector.broadcast %46 : vector<8x1xf32> to vector<8x128xf32>
    %48 = arith.subf %44, %47 : vector<8x128xf32>
    %49 = math.exp %48 : vector<8x128xf32>
    %cst_25 = arith.constant dense<0.000000e+00> : vector<8xf32>
    %50 = vector.multi_reduction <add>, %49, %cst_25 [1] : vector<8x128xf32> to vector<8xf32>
    %51 = vector.shape_cast %50 : vector<8xf32> to vector<8x1xf32>
    %52 = math.log %51 : vector<8x1xf32>
    %c0_26 = arith.constant 0 : index
    %c0_27 = arith.constant 0 : index
    %53 = vector.load %arg9[%c0_26, %c0_27] : memref<8x128xf32, #tpu.memory_space<vmem>>, vector<8x128xf32>
    tpu.vector_store %arg9[%c0_26, %c0_27], %42 {strides = array<i32>} : memref<8x128xf32, #tpu.memory_space<vmem>>, vector<8x128xf32>,
    %54 = arith.addf %46, %52 : vector<8x1xf32>
    %55 = vector.broadcast %54 : vector<8x1xf32> to vector<8x128xf32>
    %56 = vector.broadcast %6 : vector<1x128xf32> to vector<8x128xf32>
    %57 = arith.mulf %55, %56 : vector<8x128xf32>
    %58 = arith.subf %42, %57 : vector<8x128xf32>
    %59 = arith.index_cast %c1_i32 : i32 to index
    %c0_28 = arith.constant 0 : index
    %c0_29 = arith.constant 0 : index
    %60 = vector.load %arg8[%59, %c0_28, %c0_29] : memref<8x8x128xf32, #tpu.memory_space<vmem>>, vector<1x8x128xf32>
    %61 = vector.shape_cast %60 : vector<1x8x128xf32> to vector<8x128xf32>
    %62 = vector.shape_cast %58 : vector<8x128xf32> to vector<1x8x128xf32>
    tpu.vector_store %arg8[%59, %c0_28, %c0_29], %62 {strides = array<i32>} : memref<8x8x128xf32, #tpu.memory_space<vmem>>, vector<1x8x128xf32>,
    %c2_i32 = arith.constant 2 : i32
    %c0_30 = arith.constant 0 : index
    %c0_31 = arith.constant 0 : index
    %63 = vector.load %arg9[%c0_30, %c0_31] : memref<8x128xf32, #tpu.memory_space<vmem>>, vector<8x128xf32>
    %64 = arith.index_cast %c2_i32 : i32 to index
    %c0_32 = arith.constant 0 : index
    %c0_33 = arith.constant 0 : index
    %65 = vector.load %arg3[%64, %c0_32, %c0_33] : memref<8x8x128xf32, #tpu.memory_space<vmem>>, vector<1x8x128xf32>
    %66 = vector.shape_cast %65 : vector<1x8x128xf32> to vector<8x128xf32>
    %67 = arith.addf %63, %66 : vector<8x128xf32>
    %cst_34 = arith.constant dense<0.000000e+00> : vector<8x128xf32>
    %68 = tpu.matmul %67, %3, %cst_34 {dimension_numbers = #tpu.dot_dimension_numbers<[1], [0], [0], [1], [0, 0, 1, 1], [], []>} : vector<8x128xf32>, vector<128x128xf32>, vector<8x128xf32> -> vector<8x128xf32>
    %69 = vector.broadcast %4 : vector<1x128xf32> to vector<8x128xf32>
    %70 = arith.addf %68, %69 : vector<8x128xf32>
    %71 = vector.broadcast %5 : vector<1x128xf32> to vector<8x128xf32>
    %72 = arith.addf %70, %71 : vector<8x128xf32>
    %cst_35 = arith.constant dense<0xFF800000> : vector<8xf32>
    %73 = vector.multi_reduction <maximumf>, %72, %cst_35 [1] : vector<8x128xf32> to vector<8xf32>
    %74 = vector.shape_cast %73 : vector<8xf32> to vector<8x1xf32>
    %75 = vector.broadcast %74 : vector<8x1xf32> to vector<8x128xf32>
    %76 = arith.subf %72, %75 : vector<8x128xf32>
    %77 = math.exp %76 : vector<8x128xf32>
    %cst_36 = arith.constant dense<0.000000e+00> : vector<8xf32>
    %78 = vector.multi_reduction <add>, %77, %cst_36 [1] : vector<8x128xf32> to vector<8xf32>
    %79 = vector.shape_cast %78 : vector<8xf32> to vector<8x1xf32>
    %80 = math.log %79 : vector<8x1xf32>
    %c0_37 = arith.constant 0 : index
    %c0_38 = arith.constant 0 : index
    %81 = vector.load %arg9[%c0_37, %c0_38] : memref<8x128xf32, #tpu.memory_space<vmem>>, vector<8x128xf32>
    tpu.vector_store %arg9[%c0_37, %c0_38], %70 {strides = array<i32>} : memref<8x128xf32, #tpu.memory_space<vmem>>, vector<8x128xf32>,
    %82 = arith.addf %74, %80 : vector<8x1xf32>
    %83 = vector.broadcast %82 : vector<8x1xf32> to vector<8x128xf32>
    %84 = vector.broadcast %6 : vector<1x128xf32> to vector<8x128xf32>
    %85 = arith.mulf %83, %84 : vector<8x128xf32>
    %86 = arith.subf %70, %85 : vector<8x128xf32>
    %87 = arith.index_cast %c2_i32 : i32 to index
    %c0_39 = arith.constant 0 : index
    %c0_40 = arith.constant 0 : index
    %88 = vector.load %arg8[%87, %c0_39, %c0_40] : memref<8x8x128xf32, #tpu.memory_space<vmem>>, vector<1x8x128xf32>
    %89 = vector.shape_cast %88 : vector<1x8x128xf32> to vector<8x128xf32>
    %90 = vector.shape_cast %86 : vector<8x128xf32> to vector<1x8x128xf32>
    tpu.vector_store %arg8[%87, %c0_39, %c0_40], %90 {strides = array<i32>} : memref<8x8x128xf32, #tpu.memory_space<vmem>>, vector<1x8x128xf32>,
    %c3_i32 = arith.constant 3 : i32
    %c0_41 = arith.constant 0 : index
    %c0_42 = arith.constant 0 : index
    %91 = vector.load %arg9[%c0_41, %c0_42] : memref<8x128xf32, #tpu.memory_space<vmem>>, vector<8x128xf32>
    %92 = arith.index_cast %c3_i32 : i32 to index
    %c0_43 = arith.constant 0 : index
    %c0_44 = arith.constant 0 : index
    %93 = vector.load %arg3[%92, %c0_43, %c0_44] : memref<8x8x128xf32, #tpu.memory_space<vmem>>, vector<1x8x128xf32>
    %94 = vector.shape_cast %93 : vector<1x8x128xf32> to vector<8x128xf32>
    %95 = arith.addf %91, %94 : vector<8x128xf32>
    %cst_45 = arith.constant dense<0.000000e+00> : vector<8x128xf32>
    %96 = tpu.matmul %95, %3, %cst_45 {dimension_numbers = #tpu.dot_dimension_numbers<[1], [0], [0], [1], [0, 0, 1, 1], [], []>} : vector<8x128xf32>, vector<128x128xf32>, vector<8x128xf32> -> vector<8x128xf32>
    %97 = vector.broadcast %4 : vector<1x128xf32> to vector<8x128xf32>
    %98 = arith.addf %96, %97 : vector<8x128xf32>
    %99 = vector.broadcast %5 : vector<1x128xf32> to vector<8x128xf32>
    %100 = arith.addf %98, %99 : vector<8x128xf32>
    %cst_46 = arith.constant dense<0xFF800000> : vector<8xf32>
    %101 = vector.multi_reduction <maximumf>, %100, %cst_46 [1] : vector<8x128xf32> to vector<8xf32>
    %102 = vector.shape_cast %101 : vector<8xf32> to vector<8x1xf32>
    %103 = vector.broadcast %102 : vector<8x1xf32> to vector<8x128xf32>
    %104 = arith.subf %100, %103 : vector<8x128xf32>
    %105 = math.exp %104 : vector<8x128xf32>
    %cst_47 = arith.constant dense<0.000000e+00> : vector<8xf32>
    %106 = vector.multi_reduction <add>, %105, %cst_47 [1] : vector<8x128xf32> to vector<8xf32>
    %107 = vector.shape_cast %106 : vector<8xf32> to vector<8x1xf32>
    %108 = math.log %107 : vector<8x1xf32>
    %c0_48 = arith.constant 0 : index
    %c0_49 = arith.constant 0 : index
    %109 = vector.load %arg9[%c0_48, %c0_49] : memref<8x128xf32, #tpu.memory_space<vmem>>, vector<8x128xf32>
    tpu.vector_store %arg9[%c0_48, %c0_49], %98 {strides = array<i32>} : memref<8x128xf32, #tpu.memory_space<vmem>>, vector<8x128xf32>,
    %110 = arith.addf %102, %108 : vector<8x1xf32>
    %111 = vector.broadcast %110 : vector<8x1xf32> to vector<8x128xf32>
    %112 = vector.broadcast %6 : vector<1x128xf32> to vector<8x128xf32>
    %113 = arith.mulf %111, %112 : vector<8x128xf32>
    %114 = arith.subf %98, %113 : vector<8x128xf32>
    %115 = arith.index_cast %c3_i32 : i32 to index
    %c0_50 = arith.constant 0 : index
    %c0_51 = arith.constant 0 : index
    %116 = vector.load %arg8[%115, %c0_50, %c0_51] : memref<8x8x128xf32, #tpu.memory_space<vmem>>, vector<1x8x128xf32>
    %117 = vector.shape_cast %116 : vector<1x8x128xf32> to vector<8x128xf32>
    %118 = vector.shape_cast %114 : vector<8x128xf32> to vector<1x8x128xf32>
    tpu.vector_store %arg8[%115, %c0_50, %c0_51], %118 {strides = array<i32>} : memref<8x8x128xf32, #tpu.memory_space<vmem>>, vector<1x8x128xf32>,
    %c4_i32 = arith.constant 4 : i32
    %c0_52 = arith.constant 0 : index
    %c0_53 = arith.constant 0 : index
    %119 = vector.load %arg9[%c0_52, %c0_53] : memref<8x128xf32, #tpu.memory_space<vmem>>, vector<8x128xf32>
    %120 = arith.index_cast %c4_i32 : i32 to index
    %c0_54 = arith.constant 0 : index
    %c0_55 = arith.constant 0 : index
    %121 = vector.load %arg3[%120, %c0_54, %c0_55] : memref<8x8x128xf32, #tpu.memory_space<vmem>>, vector<1x8x128xf32>
    %122 = vector.shape_cast %121 : vector<1x8x128xf32> to vector<8x128xf32>
    %123 = arith.addf %119, %122 : vector<8x128xf32>
    %cst_56 = arith.constant dense<0.000000e+00> : vector<8x128xf32>
    %124 = tpu.matmul %123, %3, %cst_56 {dimension_numbers = #tpu.dot_dimension_numbers<[1], [0], [0], [1], [0, 0, 1, 1], [], []>} : vector<8x128xf32>, vector<128x128xf32>, vector<8x128xf32> -> vector<8x128xf32>
    %125 = vector.broadcast %4 : vector<1x128xf32> to vector<8x128xf32>
    %126 = arith.addf %124, %125 : vector<8x128xf32>
    %127 = vector.broadcast %5 : vector<1x128xf32> to vector<8x128xf32>
    %128 = arith.addf %126, %127 : vector<8x128xf32>
    %cst_57 = arith.constant dense<0xFF800000> : vector<8xf32>
    %129 = vector.multi_reduction <maximumf>, %128, %cst_57 [1] : vector<8x128xf32> to vector<8xf32>
    %130 = vector.shape_cast %129 : vector<8xf32> to vector<8x1xf32>
    %131 = vector.broadcast %130 : vector<8x1xf32> to vector<8x128xf32>
    %132 = arith.subf %128, %131 : vector<8x128xf32>
    %133 = math.exp %132 : vector<8x128xf32>
    %cst_58 = arith.constant dense<0.000000e+00> : vector<8xf32>
    %134 = vector.multi_reduction <add>, %133, %cst_58 [1] : vector<8x128xf32> to vector<8xf32>
    %135 = vector.shape_cast %134 : vector<8xf32> to vector<8x1xf32>
    %136 = math.log %135 : vector<8x1xf32>
    %c0_59 = arith.constant 0 : index
    %c0_60 = arith.constant 0 : index
    %137 = vector.load %arg9[%c0_59, %c0_60] : memref<8x128xf32, #tpu.memory_space<vmem>>, vector<8x128xf32>
    tpu.vector_store %arg9[%c0_59, %c0_60], %126 {strides = array<i32>} : memref<8x128xf32, #tpu.memory_space<vmem>>, vector<8x128xf32>,
    %138 = arith.addf %130, %136 : vector<8x1xf32>
    %139 = vector.broadcast %138 : vector<8x1xf32> to vector<8x128xf32>
    %140 = vector.broadcast %6 : vector<1x128xf32> to vector<8x128xf32>
    %141 = arith.mulf %139, %140 : vector<8x128xf32>
    %142 = arith.subf %126, %141 : vector<8x128xf32>
    %143 = arith.index_cast %c4_i32 : i32 to index
    %c0_61 = arith.constant 0 : index
    %c0_62 = arith.constant 0 : index
    %144 = vector.load %arg8[%143, %c0_61, %c0_62] : memref<8x8x128xf32, #tpu.memory_space<vmem>>, vector<1x8x128xf32>
    %145 = vector.shape_cast %144 : vector<1x8x128xf32> to vector<8x128xf32>
    %146 = vector.shape_cast %142 : vector<8x128xf32> to vector<1x8x128xf32>
    tpu.vector_store %arg8[%143, %c0_61, %c0_62], %146 {strides = array<i32>} : memref<8x8x128xf32, #tpu.memory_space<vmem>>, vector<1x8x128xf32>,
    %c5_i32 = arith.constant 5 : i32
    %c0_63 = arith.constant 0 : index
    %c0_64 = arith.constant 0 : index
    %147 = vector.load %arg9[%c0_63, %c0_64] : memref<8x128xf32, #tpu.memory_space<vmem>>, vector<8x128xf32>
    %148 = arith.index_cast %c5_i32 : i32 to index
    %c0_65 = arith.constant 0 : index
    %c0_66 = arith.constant 0 : index
    %149 = vector.load %arg3[%148, %c0_65, %c0_66] : memref<8x8x128xf32, #tpu.memory_space<vmem>>, vector<1x8x128xf32>
    %150 = vector.shape_cast %149 : vector<1x8x128xf32> to vector<8x128xf32>
    %151 = arith.addf %147, %150 : vector<8x128xf32>
    %cst_67 = arith.constant dense<0.000000e+00> : vector<8x128xf32>
    %152 = tpu.matmul %151, %3, %cst_67 {dimension_numbers = #tpu.dot_dimension_numbers<[1], [0], [0], [1], [0, 0, 1, 1], [], []>} : vector<8x128xf32>, vector<128x128xf32>, vector<8x128xf32> -> vector<8x128xf32>
    %153 = vector.broadcast %4 : vector<1x128xf32> to vector<8x128xf32>
    %154 = arith.addf %152, %153 : vector<8x128xf32>
    %155 = vector.broadcast %5 : vector<1x128xf32> to vector<8x128xf32>
    %156 = arith.addf %154, %155 : vector<8x128xf32>
    %cst_68 = arith.constant dense<0xFF800000> : vector<8xf32>
    %157 = vector.multi_reduction <maximumf>, %156, %cst_68 [1] : vector<8x128xf32> to vector<8xf32>
    %158 = vector.shape_cast %157 : vector<8xf32> to vector<8x1xf32>
    %159 = vector.broadcast %158 : vector<8x1xf32> to vector<8x128xf32>
    %160 = arith.subf %156, %159 : vector<8x128xf32>
    %161 = math.exp %160 : vector<8x128xf32>
    %cst_69 = arith.constant dense<0.000000e+00> : vector<8xf32>
    %162 = vector.multi_reduction <add>, %161, %cst_69 [1] : vector<8x128xf32> to vector<8xf32>
    %163 = vector.shape_cast %162 : vector<8xf32> to vector<8x1xf32>
    %164 = math.log %163 : vector<8x1xf32>
    %c0_70 = arith.constant 0 : index
    %c0_71 = arith.constant 0 : index
    %165 = vector.load %arg9[%c0_70, %c0_71] : memref<8x128xf32, #tpu.memory_space<vmem>>, vector<8x128xf32>
    tpu.vector_store %arg9[%c0_70, %c0_71], %154 {strides = array<i32>} : memref<8x128xf32, #tpu.memory_space<vmem>>, vector<8x128xf32>,
    %166 = arith.addf %158, %164 : vector<8x1xf32>
    %167 = vector.broadcast %166 : vector<8x1xf32> to vector<8x128xf32>
    %168 = vector.broadcast %6 : vector<1x128xf32> to vector<8x128xf32>
    %169 = arith.mulf %167, %168 : vector<8x128xf32>
    %170 = arith.subf %154, %169 : vector<8x128xf32>
    %171 = arith.index_cast %c5_i32 : i32 to index
    %c0_72 = arith.constant 0 : index
    %c0_73 = arith.constant 0 : index
    %172 = vector.load %arg8[%171, %c0_72, %c0_73] : memref<8x8x128xf32, #tpu.memory_space<vmem>>, vector<1x8x128xf32>
    %173 = vector.shape_cast %172 : vector<1x8x128xf32> to vector<8x128xf32>
    %174 = vector.shape_cast %170 : vector<8x128xf32> to vector<1x8x128xf32>
    tpu.vector_store %arg8[%171, %c0_72, %c0_73], %174 {strides = array<i32>} : memref<8x8x128xf32, #tpu.memory_space<vmem>>, vector<1x8x128xf32>,
    %c6_i32 = arith.constant 6 : i32
    %c0_74 = arith.constant 0 : index
    %c0_75 = arith.constant 0 : index
    %175 = vector.load %arg9[%c0_74, %c0_75] : memref<8x128xf32, #tpu.memory_space<vmem>>, vector<8x128xf32>
    %176 = arith.index_cast %c6_i32 : i32 to index
    %c0_76 = arith.constant 0 : index
    %c0_77 = arith.constant 0 : index
    %177 = vector.load %arg3[%176, %c0_76, %c0_77] : memref<8x8x128xf32, #tpu.memory_space<vmem>>, vector<1x8x128xf32>
    %178 = vector.shape_cast %177 : vector<1x8x128xf32> to vector<8x128xf32>
    %179 = arith.addf %175, %178 : vector<8x128xf32>
    %cst_78 = arith.constant dense<0.000000e+00> : vector<8x128xf32>
    %180 = tpu.matmul %179, %3, %cst_78 {dimension_numbers = #tpu.dot_dimension_numbers<[1], [0], [0], [1], [0, 0, 1, 1], [], []>} : vector<8x128xf32>, vector<128x128xf32>, vector<8x128xf32> -> vector<8x128xf32>
    %181 = vector.broadcast %4 : vector<1x128xf32> to vector<8x128xf32>
    %182 = arith.addf %180, %181 : vector<8x128xf32>
    %183 = vector.broadcast %5 : vector<1x128xf32> to vector<8x128xf32>
    %184 = arith.addf %182, %183 : vector<8x128xf32>
    %cst_79 = arith.constant dense<0xFF800000> : vector<8xf32>
    %185 = vector.multi_reduction <maximumf>, %184, %cst_79 [1] : vector<8x128xf32> to vector<8xf32>
    %186 = vector.shape_cast %185 : vector<8xf32> to vector<8x1xf32>
    %187 = vector.broadcast %186 : vector<8x1xf32> to vector<8x128xf32>
    %188 = arith.subf %184, %187 : vector<8x128xf32>
    %189 = math.exp %188 : vector<8x128xf32>
    %cst_80 = arith.constant dense<0.000000e+00> : vector<8xf32>
    %190 = vector.multi_reduction <add>, %189, %cst_80 [1] : vector<8x128xf32> to vector<8xf32>
    %191 = vector.shape_cast %190 : vector<8xf32> to vector<8x1xf32>
    %192 = math.log %191 : vector<8x1xf32>
    %c0_81 = arith.constant 0 : index
    %c0_82 = arith.constant 0 : index
    %193 = vector.load %arg9[%c0_81, %c0_82] : memref<8x128xf32, #tpu.memory_space<vmem>>, vector<8x128xf32>
    tpu.vector_store %arg9[%c0_81, %c0_82], %182 {strides = array<i32>} : memref<8x128xf32, #tpu.memory_space<vmem>>, vector<8x128xf32>,
    %194 = arith.addf %186, %192 : vector<8x1xf32>
    %195 = vector.broadcast %194 : vector<8x1xf32> to vector<8x128xf32>
    %196 = vector.broadcast %6 : vector<1x128xf32> to vector<8x128xf32>
    %197 = arith.mulf %195, %196 : vector<8x128xf32>
    %198 = arith.subf %182, %197 : vector<8x128xf32>
    %199 = arith.index_cast %c6_i32 : i32 to index
    %c0_83 = arith.constant 0 : index
    %c0_84 = arith.constant 0 : index
    %200 = vector.load %arg8[%199, %c0_83, %c0_84] : memref<8x8x128xf32, #tpu.memory_space<vmem>>, vector<1x8x128xf32>
    %201 = vector.shape_cast %200 : vector<1x8x128xf32> to vector<8x128xf32>
    %202 = vector.shape_cast %198 : vector<8x128xf32> to vector<1x8x128xf32>
    tpu.vector_store %arg8[%199, %c0_83, %c0_84], %202 {strides = array<i32>} : memref<8x8x128xf32, #tpu.memory_space<vmem>>, vector<1x8x128xf32>,
    %c7_i32 = arith.constant 7 : i32
    %c0_85 = arith.constant 0 : index
    %c0_86 = arith.constant 0 : index
    %203 = vector.load %arg9[%c0_85, %c0_86] : memref<8x128xf32, #tpu.memory_space<vmem>>, vector<8x128xf32>
    %204 = arith.index_cast %c7_i32 : i32 to index
    %c0_87 = arith.constant 0 : index
    %c0_88 = arith.constant 0 : index
    %205 = vector.load %arg3[%204, %c0_87, %c0_88] : memref<8x8x128xf32, #tpu.memory_space<vmem>>, vector<1x8x128xf32>
    %206 = vector.shape_cast %205 : vector<1x8x128xf32> to vector<8x128xf32>
    %207 = arith.addf %203, %206 : vector<8x128xf32>
    %cst_89 = arith.constant dense<0.000000e+00> : vector<8x128xf32>
    %208 = tpu.matmul %207, %3, %cst_89 {dimension_numbers = #tpu.dot_dimension_numbers<[1], [0], [0], [1], [0, 0, 1, 1], [], []>} : vector<8x128xf32>, vector<128x128xf32>, vector<8x128xf32> -> vector<8x128xf32>
    %209 = vector.broadcast %4 : vector<1x128xf32> to vector<8x128xf32>
    %210 = arith.addf %208, %209 : vector<8x128xf32>
    %211 = vector.broadcast %5 : vector<1x128xf32> to vector<8x128xf32>
    %212 = arith.addf %210, %211 : vector<8x128xf32>
    %cst_90 = arith.constant dense<0xFF800000> : vector<8xf32>
    %213 = vector.multi_reduction <maximumf>, %212, %cst_90 [1] : vector<8x128xf32> to vector<8xf32>
    %214 = vector.shape_cast %213 : vector<8xf32> to vector<8x1xf32>
    %215 = vector.broadcast %214 : vector<8x1xf32> to vector<8x128xf32>
    %216 = arith.subf %212, %215 : vector<8x128xf32>
    %217 = math.exp %216 : vector<8x128xf32>
    %cst_91 = arith.constant dense<0.000000e+00> : vector<8xf32>
    %218 = vector.multi_reduction <add>, %217, %cst_91 [1] : vector<8x128xf32> to vector<8xf32>
    %219 = vector.shape_cast %218 : vector<8xf32> to vector<8x1xf32>
    %220 = math.log %219 : vector<8x1xf32>
    %c0_92 = arith.constant 0 : index
    %c0_93 = arith.constant 0 : index
    %221 = vector.load %arg9[%c0_92, %c0_93] : memref<8x128xf32, #tpu.memory_space<vmem>>, vector<8x128xf32>
    tpu.vector_store %arg9[%c0_92, %c0_93], %210 {strides = array<i32>} : memref<8x128xf32, #tpu.memory_space<vmem>>, vector<8x128xf32>,
    %222 = arith.addf %214, %220 : vector<8x1xf32>
    %223 = vector.broadcast %222 : vector<8x1xf32> to vector<8x128xf32>
    %224 = vector.broadcast %6 : vector<1x128xf32> to vector<8x128xf32>
    %225 = arith.mulf %223, %224 : vector<8x128xf32>
    %226 = arith.subf %210, %225 : vector<8x128xf32>
    %227 = arith.index_cast %c7_i32 : i32 to index
    %c0_94 = arith.constant 0 : index
    %c0_95 = arith.constant 0 : index
    %228 = vector.load %arg8[%227, %c0_94, %c0_95] : memref<8x8x128xf32, #tpu.memory_space<vmem>>, vector<1x8x128xf32>
    %229 = vector.shape_cast %228 : vector<1x8x128xf32> to vector<8x128xf32>
    %230 = vector.shape_cast %226 : vector<8x128xf32> to vector<1x8x128xf32>
    tpu.vector_store %arg8[%227, %c0_94, %c0_95], %230 {strides = array<i32>} : memref<8x8x128xf32, #tpu.memory_space<vmem>>, vector<1x8x128xf32>,
    %c8_i32 = arith.constant 8 : i32
    return
  }
  func.func @transform_0(%arg0: i32, %arg1: i32) -> (i32, i32) {
    %c0_i32 = arith.constant 0 : i32
    %c0_i32_0 = arith.constant 0 : i32
    return %arg0, %c0_i32 : i32, i32
  }
  func.func @transform_1(%arg0: i32, %arg1: i32) -> (i32, i32, i32) {
    %c0_i32 = arith.constant 0 : i32
    %c0_i32_0 = arith.constant 0 : i32
    return %arg1, %arg0, %c0_i32 : i32, i32, i32
  }
  func.func @transform_2(%arg0: i32, %arg1: i32) -> (i32, i32) {
    %c0_i32 = arith.constant 0 : i32
    %c0_i32_0 = arith.constant 0 : i32
    %c0_i32_1 = arith.constant 0 : i32
    return %c0_i32, %c0_i32_0 : i32, i32
  }
  func.func @transform_3(%arg0: i32, %arg1: i32) -> (i32, i32) {
    %c0_i32 = arith.constant 0 : i32
    %c0_i32_0 = arith.constant 0 : i32
    %c0_i32_1 = arith.constant 0 : i32
    return %c0_i32, %c0_i32_0 : i32, i32
  }
  func.func @transform_4(%arg0: i32, %arg1: i32) -> (i32, i32) {
    %c0_i32 = arith.constant 0 : i32
    %c0_i32_0 = arith.constant 0 : i32
    %c0_i32_1 = arith.constant 0 : i32
    return %c0_i32, %c0_i32_0 : i32, i32
  }
  func.func @transform_5(%arg0: i32, %arg1: i32) -> (i32, i32) {
    %c0_i32 = arith.constant 0 : i32
    %c0_i32_0 = arith.constant 0 : i32
    %c0_i32_1 = arith.constant 0 : i32
    return %c0_i32, %c0_i32_0 : i32, i32
  }
  func.func @transform_6(%arg0: i32, %arg1: i32) -> (i32, i32, i32) {
    %c0_i32 = arith.constant 0 : i32
    %c0_i32_0 = arith.constant 0 : i32
    return %arg1, %arg0, %c0_i32 : i32, i32, i32
  }
}

</mosaic_0001>

<bundles_post_ra>
// kernel: rnn_forward_seq.1
= control target key start
LH: loop header
LB: loop body
LE: loop exit
PB: predicated region body
PF: predicated region fallthrough
CT: control target
= control target key end

     0   :  { %s816_s2 = inlined_call_operand.vmem [shape: f32[128,128], index: 2, kind: input, shape index: {}]   ;;  %s817_s3 = inlined_call_operand.vmem [shape: f32[1,128], index: 3, kind: input, shape index: {}]   ;;  %s818_s0 = inlined_call_operand.vmem [shape: f32[8,128], index: 0, kind: input, shape index: {}]   ;;  %s819_s1 = inlined_call_operand.vmem [shape: f32[8,8,128], index: 1, kind: input, shape index: {}]   ;;  %s820_s4 = inlined_call_operand.vmem [shape: f32[1,128], index: 4, kind: input, shape index: {}]   ;;  %s821_s5 = inlined_call_operand.vmem [shape: f32[1,128], index: 5, kind: input, shape index: {}]   ;;  %s822_s6 = inlined_call_operand.vmem [shape: f32[8,8,128], index: 6, kind: output, shape index: {}]  }
   0x1   :  { %v466_v0 = vld [vmem:[%s816_s2 + $0x78] sm:$0xff]  ;;  %v471_v1 = vld [vmem:[%s816_s2 + $0x70] sm:$0xff]  ;;  %v478_v2 = vld [vmem:[%s816_s2 + $0x68] sm:$0xff] }
   0x2   :  { %54 = vmatpush.msra.mxu0 %v466_v0  ;;  %99 = vmatpush.msra.mxu1 %v466_v0  ;;  %v487_v3 = vld [vmem:[%s816_s2 + $0x60] sm:$0xff]  ;;  %v496_v4 = vld [vmem:[%s816_s2 + $0x58] sm:$0xff]  ;;  %v505_v5 = vld [vmem:[%s816_s2 + $0x50] sm:$0xff] }
   0x3   :  { %139 = vmatpush.msra.mxu2 %v466_v0  ;;  %179 = vmatpush.msra.mxu3 %v466_v0  ;;  %v514_v6 = vld [vmem:[%s816_s2 + $0x48] sm:$0xff]  ;;  %v523_v7 = vld [vmem:[%s816_s2 + $0x40] sm:$0xff]  ;;  %v532_v8 = vld [vmem:[%s816_s2 + $0x38] sm:$0xff] }
   0x4   :  { %55 = vmatpush.msra.mxu0 %v471_v1  ;;  %100 = vmatpush.msra.mxu1 %v471_v1  ;;  %v541_v9 = vld [vmem:[%s816_s2 + $0x30] sm:$0xff]  ;;  %v550_v10 = vld [vmem:[%s816_s2 + $0x28] sm:$0xff]  ;;  %v559_v11 = vld [vmem:[%s816_s2 + $0x20] sm:$0xff] }
   0x5   :  { %140 = vmatpush.msra.mxu2 %v471_v1  ;;  %180 = vmatpush.msra.mxu3 %v471_v1  ;;  %v568_v12 = vld [vmem:[%s816_s2 + $0x18] sm:$0xff]  ;;  %v577_v13 = vld [vmem:[%s816_s2 + $0x10] sm:$0xff]  ;;  %v27_v14 = vld [vmem:[%s818_s0] sm:$0xff] }
   0x6   :  { %56 = vmatpush.msra.mxu0 %v478_v2  ;;  %101 = vmatpush.msra.mxu1 %v478_v2  ;;  %v49_v15 = vld [vmem:[%s819_s1] sm:$0xff]  ;;  %v592_v16 = vld [vmem:[%s816_s2 + $0x8] sm:$0xff]  ;;  %v381_v27 = vld [vmem:[%s819_s1 + $0x10] sm:$0xff] }
   0x7   :  { %141 = vmatpush.msra.mxu2 %v478_v2  ;;  %181 = vmatpush.msra.mxu3 %v478_v2  ;;  %v601_v17 = vld [vmem:[%s816_s2] sm:$0xff]  ;;  %v50_v18 = vadd.f32 %v49_v15, %v27_v14  ;;  %v379_v22 = vld [vmem:[%s819_s1 + $0x8] sm:$0xff]  ;;  %v383_v32 = vld [vmem:[%s819_s1 + $0x18] sm:$0xff] }
   0x8   :  { %57 = vmatpush.msra.mxu0 %v487_v3  ;;  %102 = vmatpush.msra.mxu1 %v487_v3  ;;  %v680_v19 = vld [vmem:[%s817_s3] ss:$0 sm:$0xff]  ;;  %v387_v42 = vld [vmem:[%s819_s1 + $0x28] sm:$0xff]  ;;  %v389_v50 = vld [vmem:[%s819_s1 + $0x30] sm:$0xff] }
   0x9   :  { %142 = vmatpush.msra.mxu2 %v487_v3  ;;  %182 = vmatpush.msra.mxu3 %v487_v3  ;;  %v685_v20 = vld [vmem:[%s820_s4] ss:$0 sm:$0xff] }
   0xa   :  { %58 = vmatpush.msra.mxu0 %v496_v4  ;;  %103 = vmatpush.msra.mxu1 %v496_v4  ;;  %v385_v37 = vld [vmem:[%s819_s1 + $0x20] sm:$0xff] }
   0xb   :  { %143 = vmatpush.msra.mxu2 %v496_v4  ;;  %183 = vmatpush.msra.mxu3 %v496_v4 }
   0xc   :  { %59 = vmatpush.msra.mxu0 %v505_v5  ;;  %104 = vmatpush.msra.mxu1 %v505_v5 }
   0xd   :  { %144 = vmatpush.msra.mxu2 %v505_v5  ;;  %184 = vmatpush.msra.mxu3 %v505_v5 }
   0xe   :  { %60 = vmatpush.msra.mxu0 %v514_v6  ;;  %105 = vmatpush.msra.mxu1 %v514_v6 }
   0xf   :  { %145 = vmatpush.msra.mxu2 %v514_v6  ;;  %185 = vmatpush.msra.mxu3 %v514_v6 }
  0x10   :  { %61 = vmatpush.msra.mxu0 %v523_v7  ;;  %106 = vmatpush.msra.mxu1 %v523_v7 }
  0x11   :  { %146 = vmatpush.msra.mxu2 %v523_v7  ;;  %186 = vmatpush.msra.mxu3 %v523_v7 }
  0x12   :  { %62 = vmatpush.msra.mxu0 %v532_v8  ;;  %107 = vmatpush.msra.mxu1 %v532_v8 }
  0x13   :  { %147 = vmatpush.msra.mxu2 %v532_v8  ;;  %187 = vmatpush.msra.mxu3 %v532_v8 }
  0x14   :  { %63 = vmatpush.msra.mxu0 %v541_v9  ;;  %108 = vmatpush.msra.mxu1 %v541_v9 }
  0x15   :  { %148 = vmatpush.msra.mxu2 %v541_v9  ;;  %188 = vmatpush.msra.mxu3 %v541_v9 }
  0x16   :  { %64 = vmatpush.msra.mxu0 %v550_v10  ;;  %109 = vmatpush.msra.mxu1 %v550_v10 }
  0x17   :  { %149 = vmatpush.msra.mxu2 %v550_v10  ;;  %189 = vmatpush.msra.mxu3 %v550_v10 }
  0x18   :  { %65 = vmatpush.msra.mxu0 %v559_v11  ;;  %110 = vmatpush.msra.mxu1 %v559_v11 }
  0x19   :  { %150 = vmatpush.msra.mxu2 %v559_v11  ;;  %190 = vmatpush.msra.mxu3 %v559_v11 }
  0x1a   :  { %66 = vmatpush.msra.mxu0 %v568_v12  ;;  %111 = vmatpush.msra.mxu1 %v568_v12 }
  0x1b   :  { %151 = vmatpush.msra.mxu2 %v568_v12  ;;  %191 = vmatpush.msra.mxu3 %v568_v12 }
  0x1c   :  { %67 = vmatpush.msra.mxu0 %v577_v13  ;;  %112 = vmatpush.msra.mxu1 %v577_v13 }
  0x1d   :  { %152 = vmatpush.msra.mxu2 %v577_v13  ;;  %192 = vmatpush.msra.mxu3 %v577_v13 }
  0x1e   :  { %68 = vmatpush.msra.mxu0 %v592_v16  ;;  %113 = vmatpush.msra.mxu1 %v592_v16 }
  0x1f   :  { %153 = vmatpush.msra.mxu2 %v592_v16  ;;  %193 = vmatpush.msra.mxu3 %v592_v16 }
  0x20   :  { %69 = vmatpush.msra.mxu0 %v601_v17  ;;  %114 = vmatpush.msra.mxu1 %v601_v17 }
  0x21   :  { %70 = vmatmul.f32.vlgmr.msra.gmra.mxu0 %v50_v18  ;;  %154 = vmatpush.msra.mxu2 %v601_v17 }
  0x22   :  { %194 = vmatpush.msra.mxu3 %v601_v17  ;;  %219 = vmatpush.msrb.mxu0 %v466_v0 }
  0x23   :  { %259 = vmatpush.msrb.mxu1 %v466_v0  ;;  %299 = vmatpush.msrb.mxu2 %v466_v0 }
  0x24   :  { %220 = vmatpush.msrb.mxu0 %v471_v1  ;;  %339 = vmatpush.msrb.mxu3 %v466_v0 }
  0x25   :  { %260 = vmatpush.msrb.mxu1 %v471_v1  ;;  %300 = vmatpush.msrb.mxu2 %v471_v1 }
  0x26   :  { %221 = vmatpush.msrb.mxu0 %v478_v2  ;;  %340 = vmatpush.msrb.mxu3 %v471_v1 }
  0x27   :  { %261 = vmatpush.msrb.mxu1 %v478_v2  ;;  %301 = vmatpush.msrb.mxu2 %v478_v2 }
  0x28   :  { %222 = vmatpush.msrb.mxu0 %v487_v3  ;;  %341 = vmatpush.msrb.mxu3 %v478_v2  ;;  %v756_v2 = vld [vmem:[%s821_s5] ss:$0 sm:$0xff] }
  0x29   :  { %262 = vmatpush.msrb.mxu1 %v487_v3  ;;  %302 = vmatpush.msrb.mxu2 %v487_v3 }
  0x2a   :  { %223 = vmatpush.msrb.mxu0 %v496_v4  ;;  %342 = vmatpush.msrb.mxu3 %v487_v3 }
  0x2b   :  { %263 = vmatpush.msrb.mxu1 %v496_v4  ;;  %303 = vmatpush.msrb.mxu2 %v496_v4 }
  0x2c   :  { %224 = vmatpush.msrb.mxu0 %v505_v5  ;;  %343 = vmatpush.msrb.mxu3 %v496_v4 }
  0x2d   :  { %264 = vmatpush.msrb.mxu1 %v505_v5  ;;  %304 = vmatpush.msrb.mxu2 %v505_v5 }
  0x2e   :  { %225 = vmatpush.msrb.mxu0 %v514_v6  ;;  %344 = vmatpush.msrb.mxu3 %v505_v5 }
  0x2f   :  { %265 = vmatpush.msrb.mxu1 %v514_v6  ;;  %305 = vmatpush.msrb.mxu2 %v514_v6 }
  0x30   :  { %226 = vmatpush.msrb.mxu0 %v523_v7  ;;  %345 = vmatpush.msrb.mxu3 %v514_v6  ;;  %v391_v6 = vld [vmem:[%s819_s1 + $0x38] sm:$0xff] }
  0x31   :  { %266 = vmatpush.msrb.mxu1 %v523_v7  ;;  %306 = vmatpush.msrb.mxu2 %v523_v7 }
  0x32   :  { %227 = vmatpush.msrb.mxu0 %v532_v8  ;;  %346 = vmatpush.msrb.mxu3 %v523_v7 }
  0x33   :  { %267 = vmatpush.msrb.mxu1 %v532_v8  ;;  %307 = vmatpush.msrb.mxu2 %v532_v8 }
  0x34   :  { %228 = vmatpush.msrb.mxu0 %v541_v9  ;;  %347 = vmatpush.msrb.mxu3 %v532_v8 }
  0x35   :  { %268 = vmatpush.msrb.mxu1 %v541_v9  ;;  %308 = vmatpush.msrb.mxu2 %v541_v9 }
  0x36   :  { %229 = vmatpush.msrb.mxu0 %v550_v10  ;;  %348 = vmatpush.msrb.mxu3 %v541_v9 }
  0x37   :  { %269 = vmatpush.msrb.mxu1 %v550_v10  ;;  %309 = vmatpush.msrb.mxu2 %v550_v10 }
  0x38   :  { %230 = vmatpush.msrb.mxu0 %v559_v11  ;;  %349 = vmatpush.msrb.mxu3 %v550_v10 }
  0x39   :  { %270 = vmatpush.msrb.mxu1 %v559_v11  ;;  %310 = vmatpush.msrb.mxu2 %v559_v11 }
  0x3a   :  { %231 = vmatpush.msrb.mxu0 %v568_v12  ;;  %350 = vmatpush.msrb.mxu3 %v559_v11 }
  0x3b   :  { %271 = vmatpush.msrb.mxu1 %v568_v12  ;;  %311 = vmatpush.msrb.mxu2 %v568_v12 }
  0x3c   :  { %232 = vmatpush.msrb.mxu0 %v577_v13  ;;  %351 = vmatpush.msrb.mxu3 %v568_v12 }
  0x3d   :  { %272 = vmatpush.msrb.mxu1 %v577_v13  ;;  %312 = vmatpush.msrb.mxu2 %v577_v13 }
  0x3e   :  { %233 = vmatpush.msrb.mxu0 %v592_v16  ;;  %352 = vmatpush.msrb.mxu3 %v577_v13 }
  0x3f   :  { %273 = vmatpush.msrb.mxu1 %v592_v16  ;;  %313 = vmatpush.msrb.mxu2 %v592_v16 }
  0x40   :  { %234 = vmatpush.msrb.mxu0 %v601_v17  ;;  %353 = vmatpush.msrb.mxu3 %v592_v16 }
  0x41   :  { %274 = vmatpush.msrb.mxu1 %v601_v17  ;;  %314 = vmatpush.msrb.mxu2 %v601_v17 }
  0x42   :  { %354 = vmatpush.msrb.mxu3 %v601_v17 }
  0x9e   :  { %v71_v21 = vpop.f32.mrf.mxu0 }
  0x9f   :  { %v691_v23 = vadd.f32 %v680_v19, %v71_v21 }
  0xa1   :  { %v98_v24 = vadd.f32 %v379_v22, %v691_v23  ;;  %v77_v25 = vadd.f32 %v685_v20, %v691_v23 }
  0xa3   :  { %115 = vmatmul.f32.vlgmr.msra.gmra.mxu1 %v98_v24  ;;  %78 = vmax.xlane.f32.xlu0 %v77_v25 }
 0x116   :  { %v79_v46 = vpop.xlane.xlu0 %78 }
 0x117   :  { %v80_v48 = vsub.f32 %v77_v25, %v79_v46 }
 0x119   :  { %v81_v52 = vmul.f32 1.442695, %v80_v48 }
 0x11b   :  { %396 = vpow2.f32 %v81_v52 }
 0x120   :  { %v116_v26 = vpop.f32.mrf.mxu1 }
 0x121   :  { %v700_v28 = vadd.f32 %v680_v19, %v116_v26  ;;  %v397_v58 = vpop.eup %396 }
 0x123   :  { %v138_v29 = vadd.f32 %v381_v27, %v700_v28  ;;  %v119_v30 = vadd.f32 %v685_v20, %v700_v28 }
 0x125   :  { %155 = vmatmul.f32.vlgmr.msra.gmra.mxu2 %v138_v29  ;;  %120 = vmax.xlane.f32.xlu0 %v119_v30 }
 0x198   :  { %v121_v63 = vpop.xlane.xlu0 %120 }
 0x199   :  { %v122_v0 = vsub.f32 %v119_v30, %v121_v63 }
 0x19b   :  { %v123_v8 = vmul.f32 1.442695, %v122_v0 }
 0x1a8   :  { %v156_v31 = vpop.f32.mrf.mxu2 }
 0x1a9   :  { %v709_v33 = vadd.f32 %v680_v19, %v156_v31 }
 0x1ab   :  { %v178_v34 = vadd.f32 %v383_v32, %v709_v33  ;;  %v714_v35 = vadd.f32 %v685_v20, %v709_v33 }
 0x1ad   :  { %195 = vmatmul.f32.vlgmr.msra.gmra.mxu3 %v178_v34  ;;  %160 = vmax.xlane.f32.xlu1 %v714_v35 }
 0x220   :  { %v735_v47 = vpop.xlane.xlu1 %160 }
 0x221   :  { %v162_v31 = vsub.f32 %v714_v35, %v735_v47 }
 0x230   :  { %v196_v36 = vpop.f32.mrf.mxu3 }
 0x231   :  { %v721_v38 = vadd.f32 %v680_v19, %v196_v36 }
 0x233   :  { %v218_v39 = vadd.f32 %v385_v37, %v721_v38  ;;  %v199_v40 = vadd.f32 %v685_v20, %v721_v38 }
 0x235   :  { %235 = vmatmul.f32.vlgmr.msrb.gmra.mxu0 %v218_v39  ;;  %200 = vmax.xlane.f32.xlu1 %v199_v40  ;;  %v163_v39 = vmul.f32 1.442695, %v162_v31 }
 0x2a8   :  { %v201_v53 = vpop.xlane.xlu1 %200 }
 0x2a9   :  { %v202_v56 = vsub.f32 %v199_v40, %v201_v53 }
 0x2ab   :  { %v203_v57 = vmul.f32 1.442695, %v202_v56 }
 0x2ad   :  { %398 = vpow2.f32 %v203_v57 }
 0x2b2   :  { %v236_v41 = vpop.f32.mrf.mxu0 }
 0x2b3   :  { %v730_v43 = vadd.f32 %v680_v19, %v236_v41  ;;  %v399_v59 = vpop.eup %398 }
 0x2b5   :  { %v258_v44 = vadd.f32 %v387_v42, %v730_v43  ;;  %v239_v45 = vadd.f32 %v685_v20, %v730_v43 }
 0x2b7   :  { %275 = vmatmul.f32.vlgmr.msrb.gmra.mxu1 %v258_v44  ;;  %240 = vmax.xlane.f32.xlu2 %v239_v45 }
 0x32a   :  { %v749_v60 = vpop.xlane.xlu2 %240 }
 0x32b   :  { %v242_v13 = vsub.f32 %v239_v45, %v749_v60 }
 0x32d   :  { %v243_v17 = vmul.f32 1.442695, %v242_v13 }
 0x334   :  { %v276_v49 = vpop.f32.mrf.mxu1 }
 0x335   :  { %v741_v51 = vadd.f32 %v680_v19, %v276_v49 }
 0x337   :  { %v298_v54 = vadd.f32 %v389_v50, %v741_v51  ;;  %v746_v55 = vadd.f32 %v685_v20, %v741_v51 }
 0x339   :  { %315 = vmatmul.f32.vlgmr.msrb.gmra.mxu2 %v298_v54  ;;  %280 = vmax.xlane.f32.xlu2 %v746_v55 }
 0x341   :  { %83 = vadd.xlane.f32.xlu2 %v397_v58 }
 0x349   :  { %205 = vadd.xlane.f32.xlu2 %v399_v59 }
 0x3ac   :  { %v751_v61 = vpop.xlane.xlu2 %280 }
 0x3ad   :  { %v282_v44 = vsub.f32 %v746_v55, %v751_v61 }
 0x3b4   :  { %v84_v62 = vpop.xlane.xlu2 %83 }
 0x3b5   :  { %400 = vlog2.f32 %v84_v62 }
 0x3bb   :  { %v401_v1 = vpop.eup %400 }
 0x3bc   :  { %v86_v3 = vmul.f32 0.6931472, %v401_v1  ;;  %v316_v4 = vpop.f32.mrf.mxu2  ;;  %v206_v5 = vpop.xlane.xlu2 %205 }
 0x3bd   :  { %v762_v7 = vadd.f32 %v680_v19, %v316_v4  ;;  %402 = vlog2.f32 %v206_v5 }
 0x3be   :  { %v88_v9 = vadd.f32 %v86_v3, %v79_v46  ;;  %404 = vpow2.f32 %v123_v8  ;;  %v283_v46 = vmul.f32 1.442695, %v282_v44 }
 0x3bf   :  { %v338_v10 = vadd.f32 %v391_v6, %v762_v7  ;;  %v319_v11 = vadd.f32 %v685_v20, %v762_v7  ;;  %406 = vpow2.f32 %v243_v17 }
 0x3c0   :  { %v92_v12 = vmul.f32 %v756_v2, %v88_v9 }
 0x3c1   :  { %355 = vmatmul.f32.vlgmr.msrb.gmra.mxu3 %v338_v10  ;;  %320 = vmax.xlane.f32.xlu0 %v319_v11 }
 0x3c2   :  { %v93_v14 = vsub.f32 %v691_v23, %v92_v12 }
 0x3c3   :  { %v403_v15 = vpop.eup %402 }
 0x3c4   :  { %94 = vst [vmem:[%s822_s6] sm:$0xff] %v93_v14  ;;  %v208_v16 = vmul.f32 0.6931472, %v403_v15  ;;  %v405_v21 = vpop.eup %404 }
 0x3c5   :  { %v407_v23 = vpop.eup %406 }
 0x3c6   :  { %v210_v18 = vadd.f32 %v208_v16, %v201_v53 }
 0x3c8   :  { %v211_v22 = vmul.f32 %v756_v2, %v210_v18 }
 0x3c9   :  { %125 = vadd.xlane.f32.xlu0 %v405_v21 }
 0x3ca   :  { %v212_v24 = vsub.f32 %v721_v38, %v211_v22 }
 0x3cc   :  { %384 = vst [vmem:[%s822_s6 + $0x18] sm:$0xff] %v212_v24 }
 0x3d1   :  { %245 = vadd.xlane.f32.xlu0 %v407_v23 }
 0x434   :  { %v321_v25 = vpop.xlane.xlu0 %320 }
 0x435   :  { %v322_v26 = vsub.f32 %v319_v11, %v321_v25 }
 0x437   :  { %v323_v27 = vmul.f32 1.442695, %v322_v26 }
 0x439   :  { %408 = vpow2.f32 %v323_v27 }
 0x43c   :  { %v126_v29 = vpop.xlane.xlu0 %125 }
 0x43d   :  { %410 = vlog2.f32 %v126_v29 }
 0x43f   :  { %v409_v30 = vpop.eup %408 }
 0x440   :  { %325 = vadd.xlane.f32.xlu2 %v409_v30 }
 0x443   :  { %v411_v32 = vpop.eup %410 }
 0x444   :  { %v128_v34 = vmul.f32 0.6931472, %v411_v32  ;;  %v356_v36 = vpop.f32.mrf.mxu3  ;;  %v246_v37 = vpop.xlane.xlu0 %245 }
 0x445   :  { %v357_v38 = vadd.f32 %v680_v19, %v356_v36  ;;  %412 = vlog2.f32 %v246_v37 }
 0x446   :  { %v130_v40 = vadd.f32 %v128_v34, %v121_v63  ;;  %414 = vpow2.f32 %v163_v39 }
 0x447   :  { %v359_v41 = vadd.f32 %v685_v20, %v357_v38  ;;  %416 = vpow2.f32 %v283_v46 }
 0x448   :  { %v131_v42 = vmul.f32 %v756_v2, %v130_v40 }
 0x449   :  { %360 = vmax.xlane.f32.xlu1 %v359_v41 }
 0x44a   :  { %v132_v35 = vsub.f32 %v700_v28, %v131_v42 }
 0x44b   :  { %v413_v45 = vpop.eup %412 }
 0x44c   :  { %380 = vst [vmem:[%s822_s6 + $0x8] sm:$0xff] %v132_v35  ;;  %v248_v19 = vmul.f32 0.6931472, %v413_v45  ;;  %v415_v49 = vpop.eup %414 }
 0x44d   :  { %v417_v28 = vpop.eup %416 }
 0x44e   :  { %v250_v48 = vadd.f32 %v248_v19, %v749_v60 }
 0x450   :  { %v251_v20 = vmul.f32 %v756_v2, %v250_v48 }
 0x451   :  { %165 = vadd.xlane.f32.xlu1 %v415_v49 }
 0x452   :  { %v252_v50 = vsub.f32 %v730_v43, %v251_v20 }
 0x454   :  { %386 = vst [vmem:[%s822_s6 + $0x20] sm:$0xff] %v252_v50 }
 0x459   :  { %285 = vadd.xlane.f32.xlu1 %v417_v28 }
 0x4b3   :  { %v326_v52 = vpop.xlane.xlu2 %325 }
 0x4b4   :  { %418 = vlog2.f32 %v326_v52 }
 0x4ba   :  { %v419_v53 = vpop.eup %418 }
 0x4bb   :  { %v328_v54 = vmul.f32 0.6931472, %v419_v53 }
 0x4bc   :  { %v361_v55 = vpop.xlane.xlu1 %360 }
 0x4bd   :  { %v330_v56 = vadd.f32 %v328_v54, %v321_v25  ;;  %v362_v57 = vsub.f32 %v359_v41, %v361_v55 }
 0x4bf   :  { %v331_v58 = vmul.f32 %v756_v2, %v330_v56  ;;  %v363_v59 = vmul.f32 1.442695, %v362_v57 }
 0x4c1   :  { %v332_v60 = vsub.f32 %v762_v7, %v331_v58  ;;  %420 = vpow2.f32 %v363_v59 }
 0x4c3   :  { %390 = vst [vmem:[%s822_s6 + $0x30] sm:$0xff] %v332_v60 }
 0x4c4   :  { %v166_v43 = vpop.xlane.xlu1 %165 }
 0x4c5   :  { %422 = vlog2.f32 %v166_v43 }
 0x4c7   :  { %v421_v62 = vpop.eup %420 }
 0x4c8   :  { %365 = vadd.xlane.f32.xlu0 %v421_v62 }
 0x4cb   :  { %v423_v63 = vpop.eup %422 }
 0x4cc   :  { %v168_v0 = vmul.f32 0.6931472, %v423_v63  ;;  %v286_v1 = vpop.xlane.xlu1 %285 }
 0x4cd   :  { %424 = vlog2.f32 %v286_v1 }
 0x4ce   :  { %v170_v3 = vadd.f32 %v168_v0, %v735_v47 }
 0x4d0   :  { %v171_v4 = vmul.f32 %v756_v2, %v170_v3 }
 0x4d2   :  { %v172_v5 = vsub.f32 %v709_v33, %v171_v4 }
 0x4d3   :  { %v425_v6 = vpop.eup %424 }
 0x4d4   :  { %382 = vst [vmem:[%s822_s6 + $0x10] sm:$0xff] %v172_v5  ;;  %v288_v7 = vmul.f32 0.6931472, %v425_v6 }
 0x4d6   :  { %v290_v8 = vadd.f32 %v288_v7, %v751_v61 }
 0x4d8   :  { %v291_v9 = vmul.f32 %v756_v2, %v290_v8 }
 0x4da   :  { %v292_v10 = vsub.f32 %v741_v51, %v291_v9 }
 0x4dc   :  { %388 = vst [vmem:[%s822_s6 + $0x28] sm:$0xff] %v292_v10 }
 0x53b   :  { %v366_v47 = vpop.xlane.xlu0 %365 }
 0x53c   :  { %426 = vlog2.f32 %v366_v47 }
 0x542   :  { %v427_v11 = vpop.eup %426 }
 0x543   :  { %v368_v33 = vmul.f32 0.6931472, %v427_v11 }
 0x545   :  { %v370_v12 = vadd.f32 %v368_v33, %v361_v55 }
 0x547   :  { %v371_v13 = vmul.f32 %v756_v2, %v370_v12 }
 0x549   :  { %v372_v14 = vsub.f32 %v357_v38, %v371_v13 }
 0x54b   :  { %392 = vst [vmem:[%s822_s6 + $0x38] sm:$0xff] %v372_v14 }

</bundles_post_ra>
